<compile_context>
chip_gen: v7x
topology: tpu7x:2x2x1
jax: 0.10.0
libtpu: 0.0.40
codegen_flags: <defaults>
</compile_context>

<pallas_src>
import jax
import jax.numpy as jnp
import numpy as np
from jax.experimental import pallas as pl
from jax.experimental.pallas import tpu as pltpu

NEG_SLOPE = 0.01      # nn.LeakyReLU() default
NEG_FILL = -99999.0   # constant used by the module


def _leaky_relu(x):
    return jnp.where(x >= 0, x, NEG_SLOPE * x)


# --------------------------------------------------------------------------
# Fused MatchNet forward kernel (one batch-block per program).
# --------------------------------------------------------------------------
def matchnet_kernel(xs_ref, ys_ref, xq_ref, w1_ref, b1_ref, w2_ref, b2_ref, out_ref):
    bb, Ns, D = xs_ref.shape
    Nq = xq_ref.shape[1]
    O = w2_ref.shape[1]

    w1 = w1_ref[...]
    b1 = b1_ref[...]
    w2 = w2_ref[...]
    b2 = b2_ref[...]

    def ff(x2d):
        h = jnp.dot(x2d, w1, preferred_element_type=jnp.float32) + b1
        h = _leaky_relu(h)
        return jnp.dot(h, w2, preferred_element_type=jnp.float32) + b2

    # Shared embedding MLP; batch collapsed into rows (one MXU matmul per input).
    fs = ff(xs_ref[...].reshape(bb * Ns, D)).reshape(bb, Ns, O)
    fq = ff(xq_ref[...].reshape(bb * Nq, D)).reshape(bb, Nq, O)

    # L2-normalize along the feature (lane) axis.
    fs = fs * jax.lax.rsqrt(jnp.sum(fs * fs, axis=-1, keepdims=True))
    fq = fq * jax.lax.rsqrt(jnp.sum(fq * fq, axis=-1, keepdims=True))

    # Cosine similarities and attention-weighted labels (batched MXU matmuls).
    sims = jnp.einsum("bqo,bso->bqs", fq, fs, preferred_element_type=jnp.float32)
    pred = jnp.einsum("bqs,bsy->bqy", sims, ys_ref[...],
                      preferred_element_type=jnp.float32)

    # softmax(cat([pred[..., :2], -99999, -99999], -1), -1) in closed form.
    p2 = pred[:, :, 0:2]
    m = jnp.maximum(jnp.max(p2, axis=-1, keepdims=True), NEG_FILL)
    e2 = jnp.exp(p2 - m)
    e_fill = jnp.exp(NEG_FILL - m)                 # underflows to 0 for realistic pred
    denom = jnp.sum(e2, axis=-1, keepdims=True) + 2.0 * e_fill
    out_ref[:, :, 0:2] = (e2 / denom).astype(out_ref.dtype)
    out_ref[:, :, 2:4] = jnp.broadcast_to(e_fill / denom, (bb, Nq, 2)).astype(out_ref.dtype)


def matchnet_forward(params, xs, ys, xq, *, batch_block=None):
    B, Ns, D = xs.shape
    Nq = xq.shape[1]
    dy = ys.shape[-1]
    H = params["w1"].shape[1]
    O = params["w2"].shape[1]
    assert dy >= 2

    if batch_block is None:
        batch_block = B                      # everything in one program at small B
    assert B % batch_block == 0
    grid = (B // batch_block,)

    rows = B * (Ns + Nq)
    flops = (2 * rows * (D * H + H * O)          # shared MLP
             + 2 * B * Nq * Ns * O               # sims
             + 2 * B * Nq * Ns * dy              # pred
             + 4 * rows * O)                     # normalization (rough)
    transcendentals = rows + 3 * B * Nq
    bytes_accessed = 4 * (xs.size + ys.size + xq.size + B * Nq * 4
                          + params["w1"].size + params["b1"].size
                          + params["w2"].size + params["b2"].size)

    return pl.pallas_call(
        matchnet_kernel,
        out_shape=jax.ShapeDtypeStruct((B, Nq, 4), xs.dtype),
        grid=grid,
        in_specs=[
            pl.BlockSpec((batch_block, Ns, D), lambda i: (i, 0, 0)),
            pl.BlockSpec((batch_block, Ns, dy), lambda i: (i, 0, 0)),
            pl.BlockSpec((batch_block, Nq, D), lambda i: (i, 0, 0)),
            pl.BlockSpec((D, H), lambda i: (0, 0)),
            pl.BlockSpec((1, H), lambda i: (0, 0)),
            pl.BlockSpec((H, O), lambda i: (0, 0)),
            pl.BlockSpec((1, O), lambda i: (0, 0)),
        ],
        out_specs=pl.BlockSpec((batch_block, Nq, 4), lambda i: (i, 0, 0)),
        compiler_params=pltpu.CompilerParams(
            dimension_semantics=("parallel",)),   # batch blocks shard across TCs (v7x)
        cost_estimate=pl.CostEstimate(flops=int(flops),
                                      transcendentals=int(transcendentals),
                                      bytes_accessed=int(bytes_accessed)),
    )(xs, ys, xq, params["w1"], params["b1"], params["w2"], params["b2"])


# --------------------------------------------------------------------------
# Parameter init (PyTorch-Linear-style uniform(-1/sqrt(fan_in))).
# Weights stored as (in, out); biases as (1, out) so they stay 2-D on TPU.
# --------------------------------------------------------------------------
def _linear_params(key, fan_in, fan_out):
    kw, kb = jax.random.split(key)
    bound = 1.0 / np.sqrt(fan_in)
    w = jax.random.uniform(kw, (fan_in, fan_out), jnp.float32, -bound, bound)
    b = jax.random.uniform(kb, (1, fan_out), jnp.float32, -bound, bound)
    return w, b


def init_params(key, inp_dim, hidden_dim, out_dim):
    k1, k2 = jax.random.split(key)
    w1, b1 = _linear_params(k1, inp_dim, hidden_dim)
    w2, b2 = _linear_params(k2, hidden_dim, out_dim)
    return {"w1": w1, "b1": b1, "w2": w2, "b2": b2}


# --------------------------------------------------------------------------
# Pure-JAX reference mirroring the PyTorch forward (full-f32 matmuls).
# --------------------------------------------------------------------------
def matchnet_reference(params, xs, ys, xq):
    hi = jax.lax.Precision.HIGHEST

    def ff(x):
        h = _leaky_relu(jnp.einsum("bnd,dh->bnh", x, params["w1"], precision=hi)
                        + params["b1"])
        return jnp.einsum("bnh,ho->bno", h, params["w2"], precision=hi) + params["b2"]

    fs = ff(xs)
    fq = ff(xq)
    fs = fs / jnp.sqrt(jnp.sum(fs * fs, axis=-1, keepdims=True))
    fq = fq / jnp.sqrt(jnp.sum(fq * fq, axis=-1, keepdims=True))
    sims = jnp.einsum("bqo,bso->bqs", fq, fs, precision=hi)
    pred = jnp.einsum("bqs,bsy->bqy", sims, ys, precision=hi)
    logits = jnp.concatenate(
        [pred[:, :, :2], NEG_FILL * jnp.ones_like(pred[:, :, :2])], axis=-1)
    return jax.nn.softmax(logits, axis=-1)


if __name__ == "__main__":
    # Small shapes consistent with the module.
    B, Ns, Nq = 2, 8, 8
    inp_dim, hidden_dim, out_dim = 4, 32, 16
    dy = 4                                   # label dim; module uses pred[..., :2]

    key = jax.random.PRNGKey(0)
    kp, kxs, kys, kxq = jax.random.split(key, 4)
    params = init_params(kp, inp_dim, hidden_dim, out_dim)

    xs = jax.random.normal(kxs, (B, Ns, inp_dim), jnp.float32)
    ys = jax.random.normal(kys, (B, Ns, dy), jnp.float32)
    xq = jax.random.normal(kxq, (B, Nq, inp_dim), jnp.float32)

    fwd = jax.jit(matchnet_forward)
    pred = jax.block_until_ready(fwd(params, xs, ys, xq))

    ref = matchnet_reference(params, xs, ys, xq)
    assert pred.shape == (B, Nq, 4), pred.shape
    np.testing.assert_allclose(np.asarray(pred), np.asarray(ref), rtol=1e-4, atol=1e-5)

    print("KERNEL_OK")
</pallas_src>

<mosaic_0001>
module attributes {stable_mosaic.version = 11 : i64} {
  func.func @matchnet_kernel(%arg0: i32, %arg1: memref<2x8x4xf32, #tpu.memory_space<vmem>>, %arg2: memref<2x8x4xf32, #tpu.memory_space<vmem>>, %arg3: memref<2x8x4xf32, #tpu.memory_space<vmem>>, %arg4: memref<4x32xf32, #tpu.memory_space<vmem>>, %arg5: memref<1x32xf32, #tpu.memory_space<vmem>>, %arg6: memref<32x16xf32, #tpu.memory_space<vmem>>, %arg7: memref<1x16xf32, #tpu.memory_space<vmem>>, %arg8: memref<2x8x4xf32, #tpu.memory_space<vmem>>) attributes {dimension_semantics = [#tpu.dimension_semantics<parallel>], iteration_bounds = array<i64: 1>, scalar_prefetch = 0 : i64, scratch_operands = 0 : i64, tpu.core_type = #tpu.core_type<tc>, window_params = [{transform_indices = @transform_0, window_bounds = array<i64: 2, 8, 4>}, {transform_indices = @transform_1, window_bounds = array<i64: 2, 8, 4>}, {transform_indices = @transform_2, window_bounds = array<i64: 2, 8, 4>}, {pipeline_mode = #tpu.pipeline_mode<synchronous>, transform_indices = @transform_3, window_bounds = array<i64: 4, 32>}, {pipeline_mode = #tpu.pipeline_mode<synchronous>, transform_indices = @transform_4, window_bounds = array<i64: 1, 32>}, {pipeline_mode = #tpu.pipeline_mode<synchronous>, transform_indices = @transform_5, window_bounds = array<i64: 32, 16>}, {pipeline_mode = #tpu.pipeline_mode<synchronous>, transform_indices = @transform_6, window_bounds = array<i64: 1, 16>}, {transform_indices = @transform_7, window_bounds = array<i64: 2, 8, 4>}]} {
    %c0 = arith.constant 0 : index
    %c0_0 = arith.constant 0 : index
    %0 = vector.load %arg4[%c0, %c0_0] : memref<4x32xf32, #tpu.memory_space<vmem>>, vector<4x32xf32>
    %c0_1 = arith.constant 0 : index
    %c0_2 = arith.constant 0 : index
    %1 = vector.load %arg5[%c0_1, %c0_2] : memref<1x32xf32, #tpu.memory_space<vmem>>, vector<1x32xf32>
    %c0_3 = arith.constant 0 : index
    %c0_4 = arith.constant 0 : index
    %2 = vector.load %arg6[%c0_3, %c0_4] : memref<32x16xf32, #tpu.memory_space<vmem>>, vector<32x16xf32>
    %c0_5 = arith.constant 0 : index
    %c0_6 = arith.constant 0 : index
    %3 = vector.load %arg7[%c0_5, %c0_6] : memref<1x16xf32, #tpu.memory_space<vmem>>, vector<1x16xf32>
    %c0_7 = arith.constant 0 : index
    %c0_8 = arith.constant 0 : index
    %c0_9 = arith.constant 0 : index
    %4 = vector.load %arg1[%c0_7, %c0_8, %c0_9] : memref<2x8x4xf32, #tpu.memory_space<vmem>>, vector<2x8x4xf32>
    %5 = vector.shape_cast %4 : vector<2x8x4xf32> to vector<16x4xf32>
    %cst = arith.constant dense<0.000000e+00> : vector<16x32xf32>
    %6 = tpu.matmul %5, %0, %cst {dimension_numbers = #tpu.dot_dimension_numbers<[1], [0], [0], [1], [0, 0, 1, 1], [], []>} : vector<16x4xf32>, vector<4x32xf32>, vector<16x32xf32> -> vector<16x32xf32>
    %7 = vector.broadcast %1 : vector<1x32xf32> to vector<16x32xf32>
    %8 = arith.addf %6, %7 : vector<16x32xf32>
    %cst_10 = arith.constant 0.000000e+00 : f32
    %9 = vector.broadcast %cst_10 : f32 to vector<16x32xf32>
    %10 = arith.cmpf oge, %8, %9 : vector<16x32xf32>
    %cst_11 = arith.constant 0.00999999977 : f32
    %11 = vector.broadcast %cst_11 : f32 to vector<16x32xf32>
    %12 = arith.mulf %11, %8 : vector<16x32xf32>
    %13 = arith.select %10, %8, %12 : vector<16x32xi1>, vector<16x32xf32>
    %cst_12 = arith.constant dense<0.000000e+00> : vector<16x16xf32>
    %14 = tpu.matmul %13, %2, %cst_12 {dimension_numbers = #tpu.dot_dimension_numbers<[1], [0], [0], [1], [0, 0, 1, 1], [], []>} : vector<16x32xf32>, vector<32x16xf32>, vector<16x16xf32> -> vector<16x16xf32>
    %15 = vector.broadcast %3 : vector<1x16xf32> to vector<16x16xf32>
    %16 = arith.addf %14, %15 : vector<16x16xf32>
    %17 = vector.shape_cast %16 : vector<16x16xf32> to vector<2x8x16xf32>
    %c0_13 = arith.constant 0 : index
    %c0_14 = arith.constant 0 : index
    %c0_15 = arith.constant 0 : index
    %18 = vector.load %arg3[%c0_13, %c0_14, %c0_15] : memref<2x8x4xf32, #tpu.memory_space<vmem>>, vector<2x8x4xf32>
    %19 = vector.shape_cast %18 : vector<2x8x4xf32> to vector<16x4xf32>
    %cst_16 = arith.constant dense<0.000000e+00> : vector<16x32xf32>
    %20 = tpu.matmul %19, %0, %cst_16 {dimension_numbers = #tpu.dot_dimension_numbers<[1], [0], [0], [1], [0, 0, 1, 1], [], []>} : vector<16x4xf32>, vector<4x32xf32>, vector<16x32xf32> -> vector<16x32xf32>
    %21 = vector.broadcast %1 : vector<1x32xf32> to vector<16x32xf32>
    %22 = arith.addf %20, %21 : vector<16x32xf32>
    %cst_17 = arith.constant 0.000000e+00 : f32
    %23 = vector.broadcast %cst_17 : f32 to vector<16x32xf32>
    %24 = arith.cmpf oge, %22, %23 : vector<16x32xf32>
    %cst_18 = arith.constant 0.00999999977 : f32
    %25 = vector.broadcast %cst_18 : f32 to vector<16x32xf32>
    %26 = arith.mulf %25, %22 : vector<16x32xf32>
    %27 = arith.select %24, %22, %26 : vector<16x32xi1>, vector<16x32xf32>
    %cst_19 = arith.constant dense<0.000000e+00> : vector<16x16xf32>
    %28 = tpu.matmul %27, %2, %cst_19 {dimension_numbers = #tpu.dot_dimension_numbers<[1], [0], [0], [1], [0, 0, 1, 1], [], []>} : vector<16x32xf32>, vector<32x16xf32>, vector<16x16xf32> -> vector<16x16xf32>
    %29 = vector.broadcast %3 : vector<1x16xf32> to vector<16x16xf32>
    %30 = arith.addf %28, %29 : vector<16x16xf32>
    %31 = vector.shape_cast %30 : vector<16x16xf32> to vector<2x8x16xf32>
    %32 = arith.mulf %17, %17 : vector<2x8x16xf32>
    %cst_20 = arith.constant dense<0.000000e+00> : vector<2x8xf32>
    %33 = vector.multi_reduction <add>, %32, %cst_20 [2] : vector<2x8x16xf32> to vector<2x8xf32>
    %34 = vector.shape_cast %33 : vector<2x8xf32> to vector<2x8x1xf32>
    %35 = math.rsqrt %34 : vector<2x8x1xf32>
    %36 = vector.broadcast %35 : vector<2x8x1xf32> to vector<2x8x16xf32>
    %37 = arith.mulf %17, %36 : vector<2x8x16xf32>
    %38 = arith.mulf %31, %31 : vector<2x8x16xf32>
    %cst_21 = arith.constant dense<0.000000e+00> : vector<2x8xf32>
    %39 = vector.multi_reduction <add>, %38, %cst_21 [2] : vector<2x8x16xf32> to vector<2x8xf32>
    %40 = vector.shape_cast %39 : vector<2x8xf32> to vector<2x8x1xf32>
    %41 = math.rsqrt %40 : vector<2x8x1xf32>
    %42 = vector.broadcast %41 : vector<2x8x1xf32> to vector<2x8x16xf32>
    %43 = arith.mulf %31, %42 : vector<2x8x16xf32>
    "tpu.trace_start"() <{level = 10 : i32, message = "bqo,bso->bqs"}> : () -> ()
    %cst_22 = arith.constant dense<0.000000e+00> : vector<2x8x8xf32>
    %44 = tpu.matmul %43, %37, %cst_22 {dimension_numbers = #tpu.dot_dimension_numbers<[2], [2], [1], [1], [0, 0, 0, 1, 1, 1], [0], [0]>} : vector<2x8x16xf32>, vector<2x8x16xf32>, vector<2x8x8xf32> -> vector<2x8x8xf32>
    "tpu.trace_stop"() : () -> ()
    %c0_23 = arith.constant 0 : index
    %c0_24 = arith.constant 0 : index
    %c0_25 = arith.constant 0 : index
    %45 = vector.load %arg2[%c0_23, %c0_24, %c0_25] : memref<2x8x4xf32, #tpu.memory_space<vmem>>, vector<2x8x4xf32>
    "tpu.trace_start"() <{level = 10 : i32, message = "bqs,bsy->bqy"}> : () -> ()
    %cst_26 = arith.constant dense<0.000000e+00> : vector<2x8x4xf32>
    %46 = tpu.matmul %44, %45, %cst_26 {dimension_numbers = #tpu.dot_dimension_numbers<[2], [1], [1], [2], [0, 0, 0, 1, 1, 2], [0], [0]>} : vector<2x8x8xf32>, vector<2x8x4xf32>, vector<2x8x4xf32> -> vector<2x8x4xf32>
    "tpu.trace_stop"() : () -> ()
    %47 = vector.extract_strided_slice %46 {offsets = [0, 0, 0], sizes = [2, 8, 2], strides = [1, 1, 1]} : vector<2x8x4xf32> to vector<2x8x2xf32>
    %cst_27 = arith.constant dense<0xFF800000> : vector<2x8xf32>
    %48 = vector.multi_reduction <maximumf>, %47, %cst_27 [2] : vector<2x8x2xf32> to vector<2x8xf32>
    %49 = vector.shape_cast %48 : vector<2x8xf32> to vector<2x8x1xf32>
    %cst_28 = arith.constant -9.999900e+04 : f32
    %50 = vector.broadcast %cst_28 : f32 to vector<2x8x1xf32>
    %51 = arith.maximumf %49, %50 : vector<2x8x1xf32>
    %52 = vector.broadcast %51 : vector<2x8x1xf32> to vector<2x8x2xf32>
    %53 = arith.subf %47, %52 : vector<2x8x2xf32>
    %54 = math.exp %53 : vector<2x8x2xf32>
    %cst_29 = arith.constant -9.999900e+04 : f32
    %55 = vector.broadcast %cst_29 : f32 to vector<2x8x1xf32>
    %56 = arith.subf %55, %51 : vector<2x8x1xf32>
    %57 = math.exp %56 : vector<2x8x1xf32>
    %cst_30 = arith.constant dense<0.000000e+00> : vector<2x8xf32>
    %58 = vector.multi_reduction <add>, %54, %cst_30 [2] : vector<2x8x2xf32> to vector<2x8xf32>
    %59 = vector.shape_cast %58 : vector<2x8xf32> to vector<2x8x1xf32>
    %cst_31 = arith.constant 2.000000e+00 : f32
    %60 = vector.broadcast %cst_31 : f32 to vector<2x8x1xf32>
    %61 = arith.mulf %60, %57 : vector<2x8x1xf32>
    %62 = arith.addf %59, %61 : vector<2x8x1xf32>
    %63 = vector.broadcast %62 : vector<2x8x1xf32> to vector<2x8x2xf32>
    %64 = arith.divf %54, %63 : vector<2x8x2xf32>
    %c0_32 = arith.constant 0 : index
    %c0_33 = arith.constant 0 : index
    %c0_34 = arith.constant 0 : index
    %65 = vector.load %arg8[%c0_32, %c0_33, %c0_34] : memref<2x8x4xf32, #tpu.memory_space<vmem>>, vector<2x8x2xf32>
    tpu.vector_store %arg8[%c0_32, %c0_33, %c0_34], %64 {strides = array<i32>} : memref<2x8x4xf32, #tpu.memory_space<vmem>>, vector<2x8x2xf32>,
    %66 = arith.divf %57, %62 : vector<2x8x1xf32>
    %67 = vector.shape_cast %66 : vector<2x8x1xf32> to vector<2x8x1xf32>
    %68 = vector.broadcast %67 : vector<2x8x1xf32> to vector<2x8x2xf32>
    %c0_35 = arith.constant 0 : index
    %c0_36 = arith.constant 0 : index
    %c2 = arith.constant 2 : index
    %69 = vector.load %arg8[%c0_35, %c0_36, %c2] : memref<2x8x4xf32, #tpu.memory_space<vmem>>, vector<2x8x2xf32>
    tpu.vector_store %arg8[%c0_35, %c0_36, %c2], %68 {strides = array<i32>} : memref<2x8x4xf32, #tpu.memory_space<vmem>>, vector<2x8x2xf32>,
    return
  }
  func.func @transform_0(%arg0: i32) -> (i32, i32, i32) {
    %c0_i32 = arith.constant 0 : i32
    %c0_i32_0 = arith.constant 0 : i32
    %c0_i32_1 = arith.constant 0 : i32
    return %arg0, %c0_i32, %c0_i32_0 : i32, i32, i32
  }
  func.func @transform_1(%arg0: i32) -> (i32, i32, i32) {
    %c0_i32 = arith.constant 0 : i32
    %c0_i32_0 = arith.constant 0 : i32
    %c0_i32_1 = arith.constant 0 : i32
    return %arg0, %c0_i32, %c0_i32_0 : i32, i32, i32
  }
  func.func @transform_2(%arg0: i32) -> (i32, i32, i32) {
    %c0_i32 = arith.constant 0 : i32
    %c0_i32_0 = arith.constant 0 : i32
    %c0_i32_1 = arith.constant 0 : i32
    return %arg0, %c0_i32, %c0_i32_0 : i32, i32, i32
  }
  func.func @transform_3(%arg0: i32) -> (i32, i32) {
    %c0_i32 = arith.constant 0 : i32
    %c0_i32_0 = arith.constant 0 : i32
    %c0_i32_1 = arith.constant 0 : i32
    return %c0_i32, %c0_i32_0 : i32, i32
  }
  func.func @transform_4(%arg0: i32) -> (i32, i32) {
    %c0_i32 = arith.constant 0 : i32
    %c0_i32_0 = arith.constant 0 : i32
    %c0_i32_1 = arith.constant 0 : i32
    return %c0_i32, %c0_i32_0 : i32, i32
  }
  func.func @transform_5(%arg0: i32) -> (i32, i32) {
    %c0_i32 = arith.constant 0 : i32
    %c0_i32_0 = arith.constant 0 : i32
    %c0_i32_1 = arith.constant 0 : i32
    return %c0_i32, %c0_i32_0 : i32, i32
  }
  func.func @transform_6(%arg0: i32) -> (i32, i32) {
    %c0_i32 = arith.constant 0 : i32
    %c0_i32_0 = arith.constant 0 : i32
    %c0_i32_1 = arith.constant 0 : i32
    return %c0_i32, %c0_i32_0 : i32, i32
  }
  func.func @transform_7(%arg0: i32) -> (i32, i32, i32) {
    %c0_i32 = arith.constant 0 : i32
    %c0_i32_0 = arith.constant 0 : i32
    %c0_i32_1 = arith.constant 0 : i32
    return %arg0, %c0_i32, %c0_i32_0 : i32, i32, i32
  }
}

</mosaic_0001>

<bundles_post_ra>
// kernel: matchnet_forward.1
= control target key start
LH: loop header
LB: loop body
LE: loop exit
PB: predicated region body
PF: predicated region fallthrough
CT: control target
= control target key end

     0   :  { %vm48_vm0 = vcmask 1043456   ;;  %vm41_vm1 = vcmask 31744   ;;  %vm139_vm4 = vcmask 261120   ;;  %vm393_vm7 = vcmask 130048   ;;  %s1008_s3 = inlined_call_operand.vmem [shape: f32[4,32], index: 3, kind: input, shape index: {}]   ;;  %s1009_s0 = inlined_call_operand.vmem [shape: f32[2,8,4], index: 0, kind: input, shape index: {}]   ;;  %s1010_s2 = inlined_call_operand.vmem [shape: f32[2,8,4], index: 2, kind: input, shape index: {}]   ;;  %s1011_s5 = inlined_call_operand.vmem [shape: f32[32,16], index: 5, kind: input, shape index: {}]   ;;  %s1012_s4 = inlined_call_operand.vmem [shape: f32[1,32], index: 4, kind: input, shape index: {}]   ;;  %s1013_s6 = inlined_call_operand.vmem [shape: f32[1,16], index: 6, kind: input, shape index: {}]   ;;  %s1014_s1 = inlined_call_operand.vmem [shape: f32[2,8,4], index: 1, kind: input, shape index: {}]   ;;  %s1015_s7 = inlined_call_operand.vmem [shape: f32[2,8,4], index: 7, kind: output, shape index: {}]  }
   0x1   :  { %v26_v0 = vld [vmem:[%s1008_s3] sm:$0xf]  ;;  %v34_v2 = vld [vmem:[%s1009_s0 + $0x8] sm:$0xff]  ;;  %v30_v8 = vld [vmem:[%s1011_s5 + $0x10] sm:$0xff]  ;;  %v897_v45 = vmov 0.0   ;;  %vm898_vm8 = vmmov 0  }
   0x2   :  { %v33_v1 = vld [vmem:[%s1009_s0] sm:$0xff]  ;;  %807 = vmatprep.subr.msk.mxu0 %vm48_vm0, %v26_v0  ;;  %v222_v4 = vld [vmem:[%s1010_s2 + $0x8] sm:$0xff]  ;;  %v31_v9 = vld [vmem:[%s1011_s5 + $0x18] sm:$0xff]  ;;  %vm570_vm9 = vcmask 64512   ;;  %vm717_vm10 = vcmask 15360   ;;  %vm756_vm11 = vcmask 31760  }
   0x3   :  { %809 = vmatprep.mubr.msk.f32.mxu0 %vm41_vm1, %v33_v1  ;;  %v221_v3 = vld [vmem:[%s1010_s2] sm:$0xff]  ;;  %808 = vmatpush3.msk.msra.mxu0 %vm48_vm0, %v26_v0  ;;  %v29_v6 = vld [vmem:[%s1011_s5 + $0x8] sm:$0xff]  ;;  %v863_v10 = vpack.c.bf16 %v31_v9, %v30_v8 }
   0x4   :  { %810 = vmatmul.mubr.msk.f32.vlgmr.msra.gmra.mrb[0].mxu0 %vm41_vm1, %v34_v2  ;;  %823 = vmatprep.subr.msk.mxu0 %vm48_vm0, %v26_v0  ;;  %v28_v5 = vld [vmem:[%s1011_s5] sm:$0xff]  ;;  %v569_v59 = vld [vmem:[%s1014_s1 + $0x8] sm:$0xff] }
   0x5   :  { %824 = vmatpush3.msk.msra.mxu0 %vm48_vm0, %v26_v0  ;;  %825 = vmatprep.mubr.msk.f32.mxu0 %vm41_vm1, %v221_v3  ;;  %v859_v7 = vpack.c.bf16 %v29_v6, %v28_v5  ;;  %v763_v11 = vld [vmem:[%s1012_s4] ss:$0 sm:$0xff] }
   0x6   :  { %v767_v28 = vld [vmem:[%s1013_s6] ss:$0 sm:$0xff] }
   0x7   :  { %860 = vmatprep.subr.bf16.mxu1 %v859_v7  ;;  %868 = vmatprep.subr.bf16.mxu0 %v859_v7  ;;  %v568_v58 = vld [vmem:[%s1014_s1] sm:$0xff] }
   0x8   :  { %826 = vmatmul.mubr.msk.f32.vlgmr.msra.gmra.mrb[2].mxu0 %vm41_vm1, %v222_v4  ;;  %862 = vmatpush3.bf16.msra.mxu1 %v859_v7 }
   0x9   :  { %870 = vmatpush3.bf16.msra.mxu0 %v859_v7  ;;  %864 = vmatprep.subr.bf16.mxu1 %v863_v10 }
   0xa   :  { %872 = vmatprep.subr.bf16.mxu0 %v863_v10 }
   0xc   :  { %866 = vmatpush3.bf16.msra.mxu1 %v863_v10 }
   0xd   :  { %874 = vmatpush3.bf16.msra.mxu0 %v863_v10  ;;  %839 = vmatprep.subr.mxu1 %v897_v45 }
   0xe   :  { %849 = vmatprep.subr.mxu0 %v897_v45 }
  0xd7   :  { %v811_v12 = vpop.f32.mrb[0].mxu0 }
  0xd8   :  { %v124_v13 = vadd.f32 %v811_v12, %v763_v11  ;;  %v118_v14 = vpop.f32.mrb[1].mxu0 }
  0xd9   :  { %v119_v15 = vadd.f32 %v763_v11, %v118_v14 }
  0xda   :  { %v130_v16 = vmul.f32 0.01, %v124_v13  ;;  %vm128_vm2 = vcmp.ge.f32.partialorder %v124_v13, 0.0 }
  0xdb   :  { %v827_v17 = vpop.f32.mrb[2].mxu0  ;;  %vm127_vm3 = vcmp.ge.f32.partialorder %v119_v15, 0.0  ;;  %v129_v18 = vmul.f32 0.01, %v119_v15 }
  0xdc   :  { %v301_v19 = vadd.f32 %v827_v17, %v763_v11  ;;  %v295_v20 = vpop.f32.mrb[3].mxu0  ;;  %v132_v24 = vsel %vm128_vm2, %v124_v13, %v130_v16 }
  0xdd   :  { %v296_v21 = vadd.f32 %v763_v11, %v295_v20  ;;  %v131_v22 = vsel %vm127_vm3, %v119_v15, %v129_v18 }
  0xde   :  { %v307_v23 = vmul.f32 0.01, %v301_v19  ;;  %820 = vmatprep.mubr.msk.f32.mxu1 %vm139_vm4, %v131_v22  ;;  %vm305_vm5 = vcmp.ge.f32.partialorder %v301_v19, 0.0 }
  0xdf   :  { %vm304_vm6 = vcmp.ge.f32.partialorder %v296_v21, 0.0  ;;  %v306_v25 = vmul.f32 0.01, %v296_v21  ;;  %821 = vmatmul.mubr.msk.f32.vlgmr.msra.gmra.mrb[0].mxu1 %vm139_vm4, %v132_v24 }
  0xe0   :  { %v309_v27 = vsel %vm305_vm5, %v301_v19, %v307_v23  ;;  %841 = vmatprep.mubr.msk.f32.mxu1 %vm898_vm8, %v897_v45 }
  0xe1   :  { %v308_v26 = vsel %vm304_vm6, %v296_v21, %v306_v25 }
  0xe2   :  { %836 = vmatprep.mubr.msk.f32.mxu0 %vm139_vm4, %v308_v26 }
  0xe3   :  { %837 = vmatmul.mubr.msk.f32.vlgmr.msra.gmra.mrb[4].mxu0 %vm139_vm4, %v309_v27 }
  0xe4   :  { %851 = vmatprep.mubr.msk.f32.mxu0 %vm898_vm8, %v897_v45  ;;  %850 = vmatpush3.msra.mxu0 %v568_v58 }
 0x1b2   :  { %v822_v29 = vpop.f32.mrb[0].mxu1 }
 0x1b3   :  { %v218_v30 = vadd.f32 %v822_v29, %v767_v28  ;;  %v212_v31 = vpop.f32.mrb[1].mxu1 }
 0x1b4   :  { %v213_v32 = vadd.f32 %v767_v28, %v212_v31 }
 0x1b5   :  { %v392_v33 = vmul.f32 %v218_v30, %v218_v30 }
 0x1b6   :  { %v838_v34 = vpop.f32.mrb[4].mxu0  ;;  %v391_v35 = vmul.f32 %v213_v32, %v213_v32 }
 0x1b7   :  { %v388_v36 = vadd.f32 %v838_v34, %v767_v28  ;;  %v382_v37 = vpop.f32.mrb[5].mxu0  ;;  %v397_v38 = vsel %vm393_vm7, %v392_v33, 0.0 }
 0x1b8   :  { %v383_v39 = vadd.f32 %v767_v28, %v382_v37  ;;  %398 = vadd.xlane.f32.xlu1 %v397_v38  ;;  %v394_v40 = vsel %vm393_vm7, %v391_v35, 0.0 }
 0x1b9   :  { %395 = vadd.xlane.f32.xlu0 %v394_v40  ;;  %v405_v41 = vmul.f32 %v388_v36, %v388_v36 }
 0x1ba   :  { %v404_v42 = vmul.f32 %v383_v39, %v383_v39 }
 0x1bb   :  { %v409_v43 = vsel %vm393_vm7, %v405_v41, 0.0 }
 0x1bc   :  { %410 = vadd.xlane.f32.xlu1 %v409_v43  ;;  %v406_v44 = vsel %vm393_vm7, %v404_v42, 0.0 }
 0x1bd   :  { %407 = vadd.xlane.f32.xlu0 %v406_v44 }
 0x245   :  { %v399_v46 = vpop.xlane.xlu1 %398 }
 0x246   :  { %v396_v47 = vpop.xlane.xlu0 %395 }
 0x247   :  { %877 = vrsqrt.f32 %v396_v47 }
 0x248   :  { %879 = vrsqrt.f32 %v399_v46 }
 0x249   :  { %v411_v48 = vpop.xlane.xlu1 %410 }
 0x24a   :  { %v408_v49 = vpop.xlane.xlu0 %407 }
 0x24b   :  { %881 = vrsqrt.f32 %v408_v49 }
 0x24c   :  { %883 = vrsqrt.f32 %v411_v48 }
 0x251   :  { %v878_v50 = vpop.eup %877 }
 0x252   :  { %v402_v51 = vmul.f32 %v878_v50, %v213_v32  ;;  %v880_v52 = vpop.eup %879 }
 0x253   :  { %v403_v56 = vmul.f32 %v880_v52, %v218_v30 }
 0x254   :  { %840 = vmatpush3.xpose.msk.msra.mxu1 %vm393_vm7, %v402_v51 }
 0x255   :  { %v882_v53 = vpop.eup %881  ;;  %844 = vmatprep.subr.mxu1 %v897_v45 }
 0x256   :  { %v414_v54 = vmul.f32 %v882_v53, %v383_v39  ;;  %v884_v55 = vpop.eup %883 }
 0x257   :  { %v415_v57 = vmul.f32 %v884_v55, %v388_v36 }
 0x258   :  { %842 = vmatmul.mubr.msk.f32.vlgmr.msra.gmra.mrb[2].mxu1 %vm393_vm7, %v414_v54 }
 0x259   :  { %845 = vmatpush3.xpose.msk.msra.mxu1 %vm393_vm7, %v403_v56  ;;  %846 = vmatprep.mubr.msk.f32.mxu1 %vm898_vm8, %v897_v45 }
 0x25a   :  { %854 = vmatprep.subr.mxu1 %v897_v45 }
 0x25c   :  { %847 = vmatmul.mubr.msk.f32.vlgmr.msra.gmra.mrb[4].mxu1 %vm393_vm7, %v415_v57 }
 0x25d   :  { %856 = vmatprep.mubr.msk.f32.mxu1 %vm898_vm8, %v897_v45  ;;  %855 = vmatpush3.msra.mxu1 %v569_v59 }
 0x32b   :  { %v488_v60 = vpop.f32.mrb[2].mxu1 }
 0x32c   :  { %v843_v61 = vpop.f32.mrb[3].mxu1  ;;  %852 = vmatmul.mubr.msk.f32.vlgmr.msra.gmra.mrb[6].mxu0 %vm570_vm9, %v488_v60 }
 0x32f   :  { %v564_v62 = vpop.f32.mrb[4].mxu1 }
 0x330   :  { %v848_v63 = vpop.f32.mrb[5].mxu1  ;;  %857 = vmatmul.mubr.msk.f32.vlgmr.msra.gmra.mrb[6].mxu1 %vm570_vm9, %v564_v62 }
 0x3ff   :  { %v640_v0 = vpop.f32.mrb[6].mxu0 }
 0x400   :  { %v853_v1 = vpop.f32.mrb[7].mxu0  ;;  %v718_v2 = vsel %vm717_vm10, %v640_v0, -inf }
 0x401   :  { %719 = vmax.xlane.f32.xlu0 %v718_v2 }
 0x403   :  { %v713_v3 = vpop.f32.mrb[6].mxu1 }
 0x404   :  { %v858_v4 = vpop.f32.mrb[7].mxu1  ;;  %v721_v5 = vsel %vm717_vm10, %v713_v3, -inf }
 0x405   :  { %722 = vmax.xlane.f32.xlu1 %v721_v5 }
 0x48e   :  { %v720_v6 = vpop.xlane.xlu0 %719 }
 0x48f   :  { %v724_v7 = vmax.f32 %v720_v6, -99999.0 }
 0x491   :  { %v726_v8 = vsub.f32 %v640_v0, %v724_v7  ;;  %v732_v18 = vsub.f32 -99999.0, %v724_v7 }
 0x492   :  { %v723_v9 = vpop.xlane.xlu1 %722 }
 0x493   :  { %v728_v10 = vmul.f32 1.442695, %v726_v8  ;;  %v725_v11 = vmax.f32 %v723_v9, -99999.0  ;;  %v734_v19 = vmul.f32 1.442695, %v732_v18 }
 0x495   :  { %885 = vpow2.f32 %v728_v10  ;;  %v727_v12 = vsub.f32 %v713_v3, %v725_v11  ;;  %v733_v20 = vsub.f32 -99999.0, %v725_v11 }
 0x497   :  { %v730_v13 = vmul.f32 1.442695, %v727_v12  ;;  %v736_v21 = vmul.f32 1.442695, %v733_v20 }
 0x499   :  { %887 = vpow2.f32 %v730_v13 }
 0x49a   :  { %889 = vpow2.f32 %v734_v19 }
 0x49b   :  { %891 = vpow2.f32 %v736_v21 }
 0x49f   :  { %v886_v14 = vpop.eup %885 }
 0x4a0   :  { %v738_v15 = vsel %vm717_vm10, %v886_v14, 0.0 }
 0x4a1   :  { %739 = vadd.xlane.f32.xlu0 %v738_v15 }
 0x4a3   :  { %v888_v16 = vpop.eup %887 }
 0x4a4   :  { %v741_v17 = vsel %vm717_vm10, %v888_v16, 0.0  ;;  %v890_v22 = vpop.eup %889 }
 0x4a5   :  { %742 = vadd.xlane.f32.xlu1 %v741_v17  ;;  %v744_v23 = vmul.f32 2.0, %v890_v22  ;;  %v892_v24 = vpop.eup %891 }
 0x4a6   :  { %v745_v27 = vmul.f32 2.0, %v892_v24 }
 0x52e   :  { %v740_v25 = vpop.xlane.xlu0 %739 }
 0x52f   :  { %v746_v26 = vadd.f32 %v744_v23, %v740_v25 }
 0x531   :  { %893 = vrcp.f32 %v746_v26 }
 0x532   :  { %v743_v28 = vpop.xlane.xlu1 %742 }
 0x533   :  { %v747_v29 = vadd.f32 %v745_v27, %v743_v28 }
 0x535   :  { %895 = vrcp.f32 %v747_v29 }
 0x53b   :  { %v894_v30 = vpop.eup %893 }
 0x53c   :  { %v749_v31 = vmul.f32 %v894_v30, %v886_v14  ;;  %v754_v32 = vmul.f32 %v894_v30, %v890_v22 }
 0x53e   :  { %752 = vst.msk [vmem:[%s1015_s7] sm:$0xff] %vm717_vm10, %v749_v31 }
 0x53f   :  { %v896_v33 = vpop.eup %895  ;;  %757 = vst.msk [vmem:[%s1015_s7] sm:$0xff] %vm756_vm11, %v754_v32 }
 0x540   :  { %v751_v34 = vmul.f32 %v896_v33, %v888_v16  ;;  %v755_v35 = vmul.f32 %v896_v33, %v892_v24 }
 0x542   :  { %753 = vst.msk [vmem:[%s1015_s7 + $0x8] sm:$0xff] %vm717_vm10, %v751_v34 }
 0x543   :  { %758 = vst.msk [vmem:[%s1015_s7 + $0x8] sm:$0xff] %vm756_vm11, %v755_v35 }

</bundles_post_ra>
